<compile_context>
chip_gen: v5e
topology: v5e:2x2
jax: 0.10.0
libtpu: 0.0.40
codegen_flags: <defaults>
</compile_context>

<pallas_src>
import jax
import jax.numpy as jnp
from jax.experimental import pallas as pl
from jax.experimental.pallas import tpu as pltpu

_LANES = 128
_MAX_COLS = 2048                  # wide (lane-dense) rows, but bounded per-row bytes
_TARGET_TILE_BYTES = 1 << 20      # ~1 MiB per tile -> ~4 MiB live with 2x double-buffering


def _identity_copy_kernel(x_ref, o_ref):
    # Pure VMEM tile move (mem-bound identity).
    o_ref[...] = x_ref[...]


def _largest_dividing_multiple(n, base, cap):
    """Largest multiple of `base` that divides `n` and is <= cap (0 if none)."""
    best = 0
    m = base
    limit = min(n, cap)
    while m <= limit:
        if n % m == 0:
            best = m
        m += base
    return best


def _sublane_multiple(dtype):
    # f32 -> 8, bf16/f16 -> 16, int8/fp8 -> 32 (sub-32-bit dtypes pack sublanes).
    itemsize = jnp.dtype(dtype).itemsize
    return max(8, 32 // max(itemsize, 1))


def _identity_pallas(x2d, tile_rows, n_bytes):
    rows, cols = x2d.shape
    grid = rows // tile_rows
    return pl.pallas_call(
        _identity_copy_kernel,
        out_shape=jax.ShapeDtypeStruct((rows, cols), x2d.dtype),
        grid_spec=pltpu.PrefetchScalarGridSpec(
            num_scalar_prefetch=0,
            grid=(grid,),
            in_specs=[pl.BlockSpec((tile_rows, cols), lambda i: (i, 0))],
            out_specs=pl.BlockSpec((tile_rows, cols), lambda i: (i, 0)),
        ),
        compiler_params=pltpu.CompilerParams(
            dimension_semantics=("parallel",)),
        cost_estimate=pl.CostEstimate(
            flops=0, transcendentals=0, bytes_accessed=2 * n_bytes),
        input_output_aliases={0: 0},
    )(x2d)


def print_layer_forward(x, idx_layer=0):
    """Forward pass of PrintLayer: prints the shape, returns x unchanged."""
    # Matches: print('print_%sth_layer (batch_size x out_dim)=%s' % (idx, x.shape))
    print('print_%sth_layer (batch_size x out_dim)=%s'
          % (idx_layer, tuple(x.shape)))

    orig_shape = x.shape
    n = x.size
    if n == 0:
        return x  # nothing to copy

    itemsize = jnp.dtype(x.dtype).itemsize
    n_bytes = n * itemsize
    sub = _sublane_multiple(x.dtype)

    # Lane-dense layout: cols is a multiple of 128 that divides the element
    # count, so every vector store is a full unmasked 128-lane write.
    cols = _largest_dividing_multiple(n, _LANES, _MAX_COLS)

    if cols == 0:
        # Odd total size (not a multiple of 128 lanes): single whole-array
        # block (block_shape == full dims satisfies TPU layout rules). Only
        # hit for tiny / irregular debug tensors.
        x2d = x.reshape(1, n) if x.ndim < 2 else x.reshape(-1, x.shape[-1])
        out2d = _identity_pallas(x2d, x2d.shape[0], n_bytes)
        return out2d.reshape(orig_shape)

    rows = n // cols

    # Tile rows in sublane multiples targeting ~1 MiB tiles so the grid
    # pipelines (double-buffered DMA) without stressing scoped VMEM on any
    # generation (v5e 16 MiB / v6e 32 MiB / v7x 32 MiB defaults).
    target_rows = max(sub, _TARGET_TILE_BYTES // (cols * itemsize))
    tile_rows = _largest_dividing_multiple(rows, sub, target_rows)
    if tile_rows == 0:
        tile_rows = rows  # small / awkward row count: single full block

    x2d = x.reshape(rows, cols)
    out2d = _identity_pallas(x2d, tile_rows, n_bytes)
    return out2d.reshape(orig_shape)


if __name__ == "__main__":
    key = jax.random.PRNGKey(0)
    # Small NCHW-style input consistent with a conv-net debug layer.
    x = jax.random.normal(key, (2, 4, 16, 16), dtype=jnp.float32)

    y = print_layer_forward(x, idx_layer=3)
    y = jax.block_until_ready(y)

    assert y.shape == x.shape
    assert y.dtype == x.dtype
    assert bool(jnp.all(y == x))

    print("KERNEL_OK")
</pallas_src>

<mosaic_0001>
module attributes {stable_mosaic.version = 11 : i64} {
  func.func @_identity_copy_kernel(%arg0: i32, %arg1: memref<1x2048xf32, #tpu.memory_space<vmem>>, %arg2: memref<1x2048xf32, #tpu.memory_space<vmem>>) attributes {dimension_semantics = [#tpu.dimension_semantics<parallel>], iteration_bounds = array<i64: 1>, scalar_prefetch = 0 : i64, scratch_operands = 0 : i64, tpu.core_type = #tpu.core_type<tc>, window_params = [{transform_indices = @transform_0, window_bounds = array<i64: 1, 2048>}, {transform_indices = @transform_1, window_bounds = array<i64: 1, 2048>}]} {
    %c0 = arith.constant 0 : index
    %c0_0 = arith.constant 0 : index
    %0 = vector.load %arg1[%c0, %c0_0] : memref<1x2048xf32, #tpu.memory_space<vmem>>, vector<1x2048xf32>
    %c0_1 = arith.constant 0 : index
    %c0_2 = arith.constant 0 : index
    %1 = vector.load %arg2[%c0_1, %c0_2] : memref<1x2048xf32, #tpu.memory_space<vmem>>, vector<1x2048xf32>
    tpu.vector_store %arg2[%c0_1, %c0_2], %0 {strides = array<i32>} : memref<1x2048xf32, #tpu.memory_space<vmem>>, vector<1x2048xf32>,
    return
  }
  func.func @transform_0(%arg0: i32) -> (i32, i32) {
    %c0_i32 = arith.constant 0 : i32
    %c0_i32_0 = arith.constant 0 : i32
    return %arg0, %c0_i32 : i32, i32
  }
  func.func @transform_1(%arg0: i32) -> (i32, i32) {
    %c0_i32 = arith.constant 0 : i32
    %c0_i32_0 = arith.constant 0 : i32
    return %arg0, %c0_i32 : i32, i32
  }
}

</mosaic_0001>

<bundles_post_ra>
// kernel: tpu_custom_call.1
= control target key start
LH: loop header
LB: loop body
LE: loop exit
PB: predicated region body
PF: predicated region fallthrough
CT: control target
= control target key end

     0   :  { %6 = vsyncpa [#allocation3], 0  ;;  %s116_s0 = inlined_call_operand.hbm [shape: f32[1,2048], index: 0, kind: input, shape index: {}, may-alias: {0,1}]   ;;  %s117_s1 = inlined_call_operand.hbm [shape: f32[1,2048], index: 1, kind: output, shape index: {}, may-alias: {0,1}]  }
   0x1   :  { %7 = vsyncpa [#allocation4], 0  ;;  %s13_s8 = sshll.u32 %s116_s0, 4  ;;  %s98_s9 = smov [#allocation2]   ;;  %s14_s8 = int_to_ptr.hbm [resolvable:$true] %s13_s8 }
   0x2   :  { %s15_s10 = sshll.u32 %s98_s9, 4  ;;  %s16_s10 = int_to_ptr.vmem [resolvable:$true] %s15_s10 }
   0x3   :  { %18 = dma.hbm_to_vmem [thread:$0]  %s14_s8, 256, %s16_s10, [#allocation3]  }
   0x4   :  { %94 = dma.done.wait [#allocation3], 256  }
   0x5   :  { %95 = vsyncadd [#allocation3], 4294967040  ;;  %s99_s11 = smov [#allocation5]   ;;  %s34_s15 = sshll.u32 %s117_s1, 4  ;;  %v23_v0 = vld [vmem:[#allocation2] sm:$0xff]  ;;  %v24_v1 = vld [vmem:[#allocation2 + $0x8] sm:$0xff]  ;;  %s35_s15 = int_to_ptr.hbm [resolvable:$true] %s34_s15 }
   0x6   :  { %s32_s12 = sshll.u32 %s99_s11, 4  ;;  %25 = vst [vmem:[#allocation5] sm:$0xff] %v23_v0  ;;  %s33_s12 = int_to_ptr.vmem [resolvable:$true] %s32_s12 }
   0x7   :  { %26 = vst [vmem:[#allocation5 + $0x8] sm:$0xff] %v24_v1 }
   0x8   :  { %37 = dma.vmem_to_hbm [thread:$0]  %s33_s12, 256, %s35_s15, [#allocation4]  }
   0x9   :  { %96 = dma.done.wait [#allocation4], 256  }
   0xa   :  { %97 = vsyncadd [#allocation4], 4294967040 }
   0xb   :  { %42 = vsyncpa [#allocation3], 1 }
   0xc   :  { %43 = vsyncpa [#allocation4], 1 }

</bundles_post_ra>
